<compile_context>
chip_gen: v7x
topology: tpu7x:2x2x1
jax: 0.10.0
libtpu: 0.0.40
codegen_flags: <defaults>
</compile_context>

<pallas_src>
import functools

import jax
import jax.numpy as jnp
from jax.experimental import pallas as pl
from jax.experimental.pallas import tpu as pltpu


# ---------------------------------------------------------------------------
# Kernel
# ---------------------------------------------------------------------------
def _critic_kernel(state_ref, action_ref,
                   ws_ref, wa_ref, b14_ref,      # fused layer-1 (both heads)
                   w2_ref, b2_ref,               # head-1 hidden (bf16 weight)
                   w5_ref, b5_ref,               # head-2 hidden (bf16 weight)
                   w36_ref, b36_ref,             # fused output rows [2, H], [1, 2]
                   out_ref):                     # fused output [B, 2]
    H = w2_ref.shape[0]

    s = state_ref[...]
    a = action_ref[...]

    # Fused layer 1 for both heads: [B, 2H] = [q1_hidden | q2_hidden].
    # concat(state, action) @ W  ==  state @ W_s + action @ W_a
    h = (jnp.dot(s, ws_ref[...], preferred_element_type=jnp.float32)
         + jnp.dot(a, wa_ref[...], preferred_element_type=jnp.float32)
         + b14_ref[...])
    h = jnp.maximum(h, 0.0)

    h1 = h[:, :H]       # head 1 (lane-boundary split, 256 = 2*128)
    h2 = h[:, H:]       # head 2

    # Layer 2: 256x256 matmuls with bf16 operands, f32 accumulation.
    h1 = jnp.dot(h1.astype(jnp.bfloat16), w2_ref[...],
                 preferred_element_type=jnp.float32) + b2_ref[...]
    h1 = jnp.maximum(h1, 0.0)
    h2 = jnp.dot(h2.astype(jnp.bfloat16), w5_ref[...],
                 preferred_element_type=jnp.float32) + b5_ref[...]
    h2 = jnp.maximum(h2, 0.0)

    # Layer 3 (out_features = 1): VPU multiply + XLU lane reduction instead of
    # a 1-column MXU matmul.
    w3_row = w36_ref[0:1, :]                                   # [1, H]
    w6_row = w36_ref[1:2, :]                                   # [1, H]
    q1 = jnp.sum(h1 * w3_row, axis=-1, keepdims=True)          # [B, 1]
    q2 = jnp.sum(h2 * w6_row, axis=-1, keepdims=True)          # [B, 1]

    out = jnp.concatenate([q1, q2], axis=1) + b36_ref[...]     # [B, 2]
    out_ref[...] = out.astype(out_ref.dtype)


# ---------------------------------------------------------------------------
# Wrapper
# ---------------------------------------------------------------------------
def critic_forward(state, action, packed_params, *, block_b=None):
    """Pallas equivalent of Critic.forward: returns (q1, q2), each [B, 1]."""
    B, sd = state.shape
    ad = action.shape[1]
    ws, wa, b14, w2, b2, w5, b5, w36, b36 = packed_params

    if block_b is None:
        # Whole batch in one invocation when small; otherwise tile the batch.
        block_b = B if B <= 1024 else 1024
    grid = (pl.cdiv(B, block_b),)

    batch_map = lambda i: (i, 0)
    const_map = lambda i: (0, 0)   # weights resident across all batch tiles

    out = pl.pallas_call(
        _critic_kernel,
        out_shape=jax.ShapeDtypeStruct((B, 2), jnp.float32),
        grid=grid,
        in_specs=[
            pl.BlockSpec((block_b, sd), batch_map),   # state
            pl.BlockSpec((block_b, ad), batch_map),   # action
            pl.BlockSpec(ws.shape, const_map),
            pl.BlockSpec(wa.shape, const_map),
            pl.BlockSpec(b14.shape, const_map),
            pl.BlockSpec(w2.shape, const_map),
            pl.BlockSpec(b2.shape, const_map),
            pl.BlockSpec(w5.shape, const_map),
            pl.BlockSpec(b5.shape, const_map),
            pl.BlockSpec(w36.shape, const_map),
            pl.BlockSpec(b36.shape, const_map),
        ],
        out_specs=pl.BlockSpec((block_b, 2), batch_map),
        compiler_params=pltpu.CompilerParams(
            dimension_semantics=("parallel",)),
    )(state, action, ws, wa, b14, w2, b2, w5, b5, w36, b36)

    return out[:, 0:1], out[:, 1:2]


def critic_q1(state, action, packed_params):
    """Equivalent of Critic.Q1 (reuses the fused forward; returns q1 only)."""
    return critic_forward(state, action, packed_params)[0]


# ---------------------------------------------------------------------------
# Parameter init / packing (done once, outside the hot path)
# ---------------------------------------------------------------------------
def init_linear(key, in_features, out_features):
    """nn.Linear-style init, weight stored [in, out] (transposed vs. PyTorch)."""
    kw, kb = jax.random.split(key)
    bound = 1.0 / jnp.sqrt(jnp.float32(in_features))
    w = jax.random.uniform(kw, (in_features, out_features), jnp.float32,
                           minval=-bound, maxval=bound)
    b = jax.random.uniform(kb, (1, out_features), jnp.float32,
                           minval=-bound, maxval=bound)
    return w, b


def init_critic_params(key, state_dim, action_dim, hidden=256):
    sa_dim = state_dim + action_dim
    keys = jax.random.split(key, 6)
    w1, b1 = init_linear(keys[0], sa_dim, hidden)
    w2, b2 = init_linear(keys[1], hidden, hidden)
    w3, b3 = init_linear(keys[2], hidden, 1)
    w4, b4 = init_linear(keys[3], sa_dim, hidden)
    w5, b5 = init_linear(keys[4], hidden, hidden)
    w6, b6 = init_linear(keys[5], hidden, 1)
    return (w1, b1, w2, b2, w3, b3, w4, b4, w5, b5, w6, b6)


def pack_critic_params(params, state_dim):
    """Pack raw per-layer params into the fused kernel layout (one-time cost)."""
    (w1, b1, w2, b2, w3, b3, w4, b4, w5, b5, w6, b6) = params
    ws = jnp.concatenate([w1[:state_dim], w4[:state_dim]], axis=1)   # [sd, 2H]
    wa = jnp.concatenate([w1[state_dim:], w4[state_dim:]], axis=1)   # [ad, 2H]
    b14 = jnp.concatenate([b1, b4], axis=1)                          # [1, 2H]
    w36 = jnp.concatenate([w3.T, w6.T], axis=0)                      # [2, H]
    b36 = jnp.concatenate([b3, b6], axis=1)                          # [1, 2]
    return (ws, wa, b14,
            w2.astype(jnp.bfloat16), b2,
            w5.astype(jnp.bfloat16), b5,
            w36, b36)


# ---------------------------------------------------------------------------
# References for correctness checking
# ---------------------------------------------------------------------------
def critic_ref_packed(state, action, packed_params):
    """Pure-JAX reference emulating the kernel's bf16 layer-2 numerics."""
    ws, wa, b14, w2, b2, w5, b5, w36, b36 = packed_params
    H = w2.shape[0]
    h = jax.nn.relu(state @ ws + action @ wa + b14)
    h1, h2 = h[:, :H], h[:, H:]
    h1 = jax.nn.relu(jnp.dot(h1.astype(jnp.bfloat16), w2,
                             preferred_element_type=jnp.float32) + b2)
    h2 = jax.nn.relu(jnp.dot(h2.astype(jnp.bfloat16), w5,
                             preferred_element_type=jnp.float32) + b5)
    q1 = jnp.sum(h1 * w36[0:1], axis=-1, keepdims=True) + b36[:, 0:1]
    q2 = jnp.sum(h2 * w36[1:2], axis=-1, keepdims=True) + b36[:, 1:2]
    return q1, q2


def critic_ref_f32(state, action, params):
    """Full-f32 reference matching the original PyTorch module exactly."""
    sa = jnp.concatenate([state, action], axis=1)
    (w1, b1, w2, b2, w3, b3, w4, b4, w5, b5, w6, b6) = params
    h = jax.nn.relu(sa @ w1 + b1)
    h = jax.nn.relu(h @ w2 + b2)
    q1 = h @ w3 + b3
    g = jax.nn.relu(sa @ w4 + b4)
    g = jax.nn.relu(g @ w5 + b5)
    q2 = g @ w6 + b6
    return q1, q2


# ---------------------------------------------------------------------------
if __name__ == "__main__":
    key = jax.random.PRNGKey(0)
    k_state, k_action, k_params = jax.random.split(key, 3)

    batch = 8
    state_dim = 12
    action_dim = 4

    state = jax.random.normal(k_state, (batch, state_dim), jnp.float32)
    action = jax.random.normal(k_action, (batch, action_dim), jnp.float32)

    raw_params = init_critic_params(k_params, state_dim, action_dim)
    packed = pack_critic_params(raw_params, state_dim)

    q1, q2 = critic_forward(state, action, packed)
    q1 = jax.block_until_ready(q1)
    q2 = jax.block_until_ready(q2)

    assert q1.shape == (batch, 1) and q2.shape == (batch, 1)

    # Tight check vs. a reference with identical (bf16 layer-2) numerics.
    q1_p, q2_p = critic_ref_packed(state, action, packed)
    assert jnp.allclose(q1, q1_p, atol=1e-3, rtol=1e-3)
    assert jnp.allclose(q2, q2_p, atol=1e-3, rtol=1e-3)

    # Loose sanity check vs. the exact f32 PyTorch-semantics reference
    # (bf16 weights in the 256x256 layers introduce a small quantization error).
    q1_f, q2_f = critic_ref_f32(state, action, raw_params)
    assert jnp.allclose(q1, q1_f, atol=1e-1)
    assert jnp.allclose(q2, q2_f, atol=1e-1)

    print("KERNEL_OK")
</pallas_src>

<mosaic_0001>
module attributes {stable_mosaic.version = 11 : i64} {
  func.func @_critic_kernel(%arg0: i32, %arg1: memref<8x12xf32, #tpu.memory_space<vmem>>, %arg2: memref<8x4xf32, #tpu.memory_space<vmem>>, %arg3: memref<12x512xf32, #tpu.memory_space<vmem>>, %arg4: memref<4x512xf32, #tpu.memory_space<vmem>>, %arg5: memref<1x512xf32, #tpu.memory_space<vmem>>, %arg6: memref<256x256xbf16, #tpu.memory_space<vmem>>, %arg7: memref<1x256xf32, #tpu.memory_space<vmem>>, %arg8: memref<256x256xbf16, #tpu.memory_space<vmem>>, %arg9: memref<1x256xf32, #tpu.memory_space<vmem>>, %arg10: memref<2x256xf32, #tpu.memory_space<vmem>>, %arg11: memref<1x2xf32, #tpu.memory_space<vmem>>, %arg12: memref<8x2xf32, #tpu.memory_space<vmem>>) attributes {dimension_semantics = [#tpu.dimension_semantics<parallel>], iteration_bounds = array<i64: 1>, scalar_prefetch = 0 : i64, scratch_operands = 0 : i64, tpu.core_type = #tpu.core_type<tc>, window_params = [{transform_indices = @transform_0, window_bounds = array<i64: 8, 12>}, {transform_indices = @transform_1, window_bounds = array<i64: 8, 4>}, {pipeline_mode = #tpu.pipeline_mode<synchronous>, transform_indices = @transform_2, window_bounds = array<i64: 12, 512>}, {pipeline_mode = #tpu.pipeline_mode<synchronous>, transform_indices = @transform_3, window_bounds = array<i64: 4, 512>}, {pipeline_mode = #tpu.pipeline_mode<synchronous>, transform_indices = @transform_4, window_bounds = array<i64: 1, 512>}, {pipeline_mode = #tpu.pipeline_mode<synchronous>, transform_indices = @transform_5, window_bounds = array<i64: 256, 256>}, {pipeline_mode = #tpu.pipeline_mode<synchronous>, transform_indices = @transform_6, window_bounds = array<i64: 1, 256>}, {pipeline_mode = #tpu.pipeline_mode<synchronous>, transform_indices = @transform_7, window_bounds = array<i64: 256, 256>}, {pipeline_mode = #tpu.pipeline_mode<synchronous>, transform_indices = @transform_8, window_bounds = array<i64: 1, 256>}, {pipeline_mode = #tpu.pipeline_mode<synchronous>, transform_indices = @transform_9, window_bounds = array<i64: 2, 256>}, {pipeline_mode = #tpu.pipeline_mode<synchronous>, transform_indices = @transform_10, window_bounds = array<i64: 1, 2>}, {transform_indices = @transform_11, window_bounds = array<i64: 8, 2>}]} {
    %c0 = arith.constant 0 : index
    %c0_0 = arith.constant 0 : index
    %0 = vector.load %arg1[%c0, %c0_0] : memref<8x12xf32, #tpu.memory_space<vmem>>, vector<8x12xf32>
    %c0_1 = arith.constant 0 : index
    %c0_2 = arith.constant 0 : index
    %1 = vector.load %arg2[%c0_1, %c0_2] : memref<8x4xf32, #tpu.memory_space<vmem>>, vector<8x4xf32>
    %c0_3 = arith.constant 0 : index
    %c0_4 = arith.constant 0 : index
    %2 = vector.load %arg3[%c0_3, %c0_4] : memref<12x512xf32, #tpu.memory_space<vmem>>, vector<12x512xf32>
    %cst = arith.constant dense<0.000000e+00> : vector<8x512xf32>
    %3 = tpu.matmul %0, %2, %cst {dimension_numbers = #tpu.dot_dimension_numbers<[1], [0], [0], [1], [0, 0, 1, 1], [], []>} : vector<8x12xf32>, vector<12x512xf32>, vector<8x512xf32> -> vector<8x512xf32>
    %c0_5 = arith.constant 0 : index
    %c0_6 = arith.constant 0 : index
    %4 = vector.load %arg4[%c0_5, %c0_6] : memref<4x512xf32, #tpu.memory_space<vmem>>, vector<4x512xf32>
    %cst_7 = arith.constant dense<0.000000e+00> : vector<8x512xf32>
    %5 = tpu.matmul %1, %4, %cst_7 {dimension_numbers = #tpu.dot_dimension_numbers<[1], [0], [0], [1], [0, 0, 1, 1], [], []>} : vector<8x4xf32>, vector<4x512xf32>, vector<8x512xf32> -> vector<8x512xf32>
    %6 = arith.addf %3, %5 : vector<8x512xf32>
    %c0_8 = arith.constant 0 : index
    %c0_9 = arith.constant 0 : index
    %7 = vector.load %arg5[%c0_8, %c0_9] : memref<1x512xf32, #tpu.memory_space<vmem>>, vector<1x512xf32>
    %8 = vector.broadcast %7 : vector<1x512xf32> to vector<8x512xf32>
    %9 = arith.addf %6, %8 : vector<8x512xf32>
    %cst_10 = arith.constant 0.000000e+00 : f32
    %10 = vector.broadcast %cst_10 : f32 to vector<8x512xf32>
    %11 = arith.maximumf %9, %10 : vector<8x512xf32>
    %12 = vector.extract_strided_slice %11 {offsets = [0, 0], sizes = [8, 256], strides = [1, 1]} : vector<8x512xf32> to vector<8x256xf32>
    %13 = vector.extract_strided_slice %11 {offsets = [0, 256], sizes = [8, 256], strides = [1, 1]} : vector<8x512xf32> to vector<8x256xf32>
    %14 = arith.truncf %12 : vector<8x256xf32> to vector<8x256xbf16>
    %c0_11 = arith.constant 0 : index
    %c0_12 = arith.constant 0 : index
    %15 = vector.load %arg6[%c0_11, %c0_12] : memref<256x256xbf16, #tpu.memory_space<vmem>>, vector<256x256xbf16>
    %cst_13 = arith.constant dense<0.000000e+00> : vector<8x256xf32>
    %16 = tpu.matmul %14, %15, %cst_13 {dimension_numbers = #tpu.dot_dimension_numbers<[1], [0], [0], [1], [0, 0, 1, 1], [], []>} : vector<8x256xbf16>, vector<256x256xbf16>, vector<8x256xf32> -> vector<8x256xf32>
    %c0_14 = arith.constant 0 : index
    %c0_15 = arith.constant 0 : index
    %17 = vector.load %arg7[%c0_14, %c0_15] : memref<1x256xf32, #tpu.memory_space<vmem>>, vector<1x256xf32>
    %18 = vector.broadcast %17 : vector<1x256xf32> to vector<8x256xf32>
    %19 = arith.addf %16, %18 : vector<8x256xf32>
    %cst_16 = arith.constant 0.000000e+00 : f32
    %20 = vector.broadcast %cst_16 : f32 to vector<8x256xf32>
    %21 = arith.maximumf %19, %20 : vector<8x256xf32>
    %22 = arith.truncf %13 : vector<8x256xf32> to vector<8x256xbf16>
    %c0_17 = arith.constant 0 : index
    %c0_18 = arith.constant 0 : index
    %23 = vector.load %arg8[%c0_17, %c0_18] : memref<256x256xbf16, #tpu.memory_space<vmem>>, vector<256x256xbf16>
    %cst_19 = arith.constant dense<0.000000e+00> : vector<8x256xf32>
    %24 = tpu.matmul %22, %23, %cst_19 {dimension_numbers = #tpu.dot_dimension_numbers<[1], [0], [0], [1], [0, 0, 1, 1], [], []>} : vector<8x256xbf16>, vector<256x256xbf16>, vector<8x256xf32> -> vector<8x256xf32>
    %c0_20 = arith.constant 0 : index
    %c0_21 = arith.constant 0 : index
    %25 = vector.load %arg9[%c0_20, %c0_21] : memref<1x256xf32, #tpu.memory_space<vmem>>, vector<1x256xf32>
    %26 = vector.broadcast %25 : vector<1x256xf32> to vector<8x256xf32>
    %27 = arith.addf %24, %26 : vector<8x256xf32>
    %cst_22 = arith.constant 0.000000e+00 : f32
    %28 = vector.broadcast %cst_22 : f32 to vector<8x256xf32>
    %29 = arith.maximumf %27, %28 : vector<8x256xf32>
    %c0_23 = arith.constant 0 : index
    %c0_24 = arith.constant 0 : index
    %30 = vector.load %arg10[%c0_23, %c0_24] : memref<2x256xf32, #tpu.memory_space<vmem>>, vector<1x256xf32>
    %c1 = arith.constant 1 : index
    %c0_25 = arith.constant 0 : index
    %31 = vector.load %arg10[%c1, %c0_25] : memref<2x256xf32, #tpu.memory_space<vmem>>, vector<1x256xf32>
    %32 = vector.broadcast %30 : vector<1x256xf32> to vector<8x256xf32>
    %33 = arith.mulf %21, %32 : vector<8x256xf32>
    %cst_26 = arith.constant dense<0.000000e+00> : vector<8xf32>
    %34 = vector.multi_reduction <add>, %33, %cst_26 [1] : vector<8x256xf32> to vector<8xf32>
    %35 = vector.shape_cast %34 : vector<8xf32> to vector<8x1xf32>
    %36 = vector.broadcast %31 : vector<1x256xf32> to vector<8x256xf32>
    %37 = arith.mulf %29, %36 : vector<8x256xf32>
    %cst_27 = arith.constant dense<0.000000e+00> : vector<8xf32>
    %38 = vector.multi_reduction <add>, %37, %cst_27 [1] : vector<8x256xf32> to vector<8xf32>
    %39 = vector.shape_cast %38 : vector<8xf32> to vector<8x1xf32>
    %40 = tpu.concatenate %35, %39 in 1 : vector<8x1xf32>, vector<8x1xf32> -> vector<8x2xf32>
    %c0_28 = arith.constant 0 : index
    %c0_29 = arith.constant 0 : index
    %41 = vector.load %arg11[%c0_28, %c0_29] : memref<1x2xf32, #tpu.memory_space<vmem>>, vector<1x2xf32>
    %42 = vector.broadcast %41 : vector<1x2xf32> to vector<8x2xf32>
    %43 = arith.addf %40, %42 : vector<8x2xf32>
    %c0_30 = arith.constant 0 : index
    %c0_31 = arith.constant 0 : index
    %44 = vector.load %arg12[%c0_30, %c0_31] : memref<8x2xf32, #tpu.memory_space<vmem>>, vector<8x2xf32>
    tpu.vector_store %arg12[%c0_30, %c0_31], %43 {strides = array<i32>} : memref<8x2xf32, #tpu.memory_space<vmem>>, vector<8x2xf32>,
    return
  }
  func.func @transform_0(%arg0: i32) -> (i32, i32) {
    %c0_i32 = arith.constant 0 : i32
    %c0_i32_0 = arith.constant 0 : i32
    return %arg0, %c0_i32 : i32, i32
  }
  func.func @transform_1(%arg0: i32) -> (i32, i32) {
    %c0_i32 = arith.constant 0 : i32
    %c0_i32_0 = arith.constant 0 : i32
    return %arg0, %c0_i32 : i32, i32
  }
  func.func @transform_2(%arg0: i32) -> (i32, i32) {
    %c0_i32 = arith.constant 0 : i32
    %c0_i32_0 = arith.constant 0 : i32
    %c0_i32_1 = arith.constant 0 : i32
    return %c0_i32, %c0_i32_0 : i32, i32
  }
  func.func @transform_3(%arg0: i32) -> (i32, i32) {
    %c0_i32 = arith.constant 0 : i32
    %c0_i32_0 = arith.constant 0 : i32
    %c0_i32_1 = arith.constant 0 : i32
    return %c0_i32, %c0_i32_0 : i32, i32
  }
  func.func @transform_4(%arg0: i32) -> (i32, i32) {
    %c0_i32 = arith.constant 0 : i32
    %c0_i32_0 = arith.constant 0 : i32
    %c0_i32_1 = arith.constant 0 : i32
    return %c0_i32, %c0_i32_0 : i32, i32
  }
  func.func @transform_5(%arg0: i32) -> (i32, i32) {
    %c0_i32 = arith.constant 0 : i32
    %c0_i32_0 = arith.constant 0 : i32
    %c0_i32_1 = arith.constant 0 : i32
    return %c0_i32, %c0_i32_0 : i32, i32
  }
  func.func @transform_6(%arg0: i32) -> (i32, i32) {
    %c0_i32 = arith.constant 0 : i32
    %c0_i32_0 = arith.constant 0 : i32
    %c0_i32_1 = arith.constant 0 : i32
    return %c0_i32, %c0_i32_0 : i32, i32
  }
  func.func @transform_7(%arg0: i32) -> (i32, i32) {
    %c0_i32 = arith.constant 0 : i32
    %c0_i32_0 = arith.constant 0 : i32
    %c0_i32_1 = arith.constant 0 : i32
    return %c0_i32, %c0_i32_0 : i32, i32
  }
  func.func @transform_8(%arg0: i32) -> (i32, i32) {
    %c0_i32 = arith.constant 0 : i32
    %c0_i32_0 = arith.constant 0 : i32
    %c0_i32_1 = arith.constant 0 : i32
    return %c0_i32, %c0_i32_0 : i32, i32
  }
  func.func @transform_9(%arg0: i32) -> (i32, i32) {
    %c0_i32 = arith.constant 0 : i32
    %c0_i32_0 = arith.constant 0 : i32
    %c0_i32_1 = arith.constant 0 : i32
    return %c0_i32, %c0_i32_0 : i32, i32
  }
  func.func @transform_10(%arg0: i32) -> (i32, i32) {
    %c0_i32 = arith.constant 0 : i32
    %c0_i32_0 = arith.constant 0 : i32
    %c0_i32_1 = arith.constant 0 : i32
    return %c0_i32, %c0_i32_0 : i32, i32
  }
  func.func @transform_11(%arg0: i32) -> (i32, i32) {
    %c0_i32 = arith.constant 0 : i32
    %c0_i32_0 = arith.constant 0 : i32
    return %arg0, %c0_i32 : i32, i32
  }
}

</mosaic_0001>

<bundles_post_ra>
// kernel: tpu_custom_call.1
= control target key start
LH: loop header
LB: loop body
LE: loop exit
PB: predicated region body
PF: predicated region fallthrough
CT: control target
= control target key end

     0   :  { %16 = vsyncpa [#allocation3], 0  ;;  %s1453_s0 = inlined_call_operand.hbm [shape: f32[8,12], index: 0, kind: input, shape index: {}]   ;;  %s1454_s1 = inlined_call_operand.vmem [shape: f32[8,4], index: 1, kind: input, shape index: {}]   ;;  %s1455_s2 = inlined_call_operand.hbm [shape: f32[12,512], index: 2, kind: input, shape index: {}]   ;;  %s1456_s3 = inlined_call_operand.vmem [shape: f32[4,512], index: 3, kind: input, shape index: {}]   ;;  %s1457_s4 = inlined_call_operand.vmem [shape: f32[1,512], index: 4, kind: input, shape index: {}]   ;;  %s1458_s5 = inlined_call_operand.hbm [shape: bf16[256,256], index: 5, kind: input, shape index: {}]   ;;  %s1459_s6 = inlined_call_operand.vmem [shape: f32[1,256], index: 6, kind: input, shape index: {}]   ;;  %s1460_s7 = inlined_call_operand.hbm [shape: bf16[256,256], index: 7, kind: input, shape index: {}]   ;;  %s1461_s8 = inlined_call_operand.vmem [shape: f32[1,256], index: 8, kind: input, shape index: {}]   ;;  %s1462_s9 = inlined_call_operand.vmem [shape: f32[2,256], index: 9, kind: input, shape index: {}]   ;;  %s1463_s10 = inlined_call_operand.vmem [shape: f32[1,2], index: 10, kind: input, shape index: {}]   ;;  %s1464_s11 = inlined_call_operand.vmem [shape: f32[8,2], index: 11, kind: output, shape index: {}]  }
   0x1   :  { %17 = vsyncpa [#allocation5], 0 }
   0x2   :  { %18 = vsyncpa [#allocation8], 0  ;;  %s1298_s17 = smov [#allocation4]   ;;  %s1204_s21 = scalar_lea.hbm %s1455_s2, 1024 }
   0x3   :  { %s36_s18 = sshll.u32 %s1298_s17, 4  ;;  %p1205_p0 = scmp.ne.s32.totalorder %s1455_s2, %s1204_s21  ;;  %s37_s18 = int_to_ptr.vmem [resolvable:$true] %s36_s18 }
   0x4   :  { %p1208_p1 = scmp.lt.u32.totalorder %s1204_s21, %s1455_s2 }
   0x6   :  { %p1210_p2 = pnand %p1208_p1, %p1205_p0 }
   0x8   :  { %1213 = shalt.err (!%p1210_p2)
}
   0x9   :  { %s1214_s26 = scalar_lea.vmem %s37_s18, 1024  ;;  %p1219_p4 = scmp.lt.s32.totalorder %s37_s18, %s37_s18 }
   0xa   :  { %p1215_p3 = scmp.ne.s32.totalorder %s37_s18, %s1214_s26  ;;  %p1220_p5 = scmp.lt.s32.totalorder %s1214_s26, %s1214_s26 }
   0xc   :  { %p1221_p6 = por %p1220_p5, %p1219_p4 }
   0xe   :  { %p1222_p7 = pnand %p1221_p6, %p1215_p3 }
  0x10   :  { %1225 = shalt.err (!%p1222_p7)
}
  0x11   :  { %s1299_s27 = smov 512   ;;  %s1300_s28 = smov 32  }
  0x12   :  { %42 = dma.hbm_to_vmem [thread:$0]  %s1455_s2, 1024, %s37_s18, [#allocation5], %s1299_s27, %s1299_s27, %s1300_s28  }
  0x13   :  { %s1301_s12 = smov [#allocation2]   ;;  %s1302_s14 = smov [#allocation6]  }
  0x14   :  { %s25_s13 = sshll.u32 %s1301_s12, 4  ;;  %s52_s15 = sshll.u32 %s1302_s14, 4  ;;  %s26_s13 = int_to_ptr.vmem [resolvable:$true] %s25_s13  ;;  %s53_s15 = int_to_ptr.vmem [resolvable:$true] %s52_s15 }
  0x15   :  { %s1226_s19 = scalar_lea.hbm %s1453_s0, 128 }
  0x16   :  { %p1227_p8 = scmp.ne.s32.totalorder %s1453_s0, %s1226_s19  ;;  %p1230_p9 = scmp.lt.u32.totalorder %s1226_s19, %s1453_s0 }
  0x18   :  { %p1232_p10 = pnand %p1230_p9, %p1227_p8 }
  0x1a   :  { %1235 = shalt.err (!%p1232_p10)
}
  0x1b   :  { %s1236_s2 = scalar_lea.vmem %s26_s13, 128  ;;  %p1241_p12 = scmp.lt.s32.totalorder %s26_s13, %s26_s13 }
  0x1c   :  { %p1237_p11 = scmp.ne.s32.totalorder %s26_s13, %s1236_s2  ;;  %p1242_p13 = scmp.lt.s32.totalorder %s1236_s2, %s1236_s2 }
  0x1e   :  { %p1243_p0 = por %p1242_p13, %p1241_p12 }
  0x20   :  { %p1244_p1 = pnand %p1243_p0, %p1237_p11 }
  0x22   :  { %1247 = shalt.err (!%p1244_p1)
}
  0x23   :  { %28 = dma.hbm_to_vmem [thread:$0]  %s1453_s0, 128, %s26_s13, [#allocation3]  }
  0x24   :  { %s1248_s27 = scalar_lea.hbm %s1458_s5, 4096 }
  0x25   :  { %p1249_p2 = scmp.ne.s32.totalorder %s1458_s5, %s1248_s27  ;;  %p1252_p3 = scmp.lt.u32.totalorder %s1248_s27, %s1458_s5 }
  0x27   :  { %p1254_p4 = pnand %p1252_p3, %p1249_p2 }
  0x29   :  { %1257 = shalt.err (!%p1254_p4)
}
  0x2a   :  { %s1258_s14 = scalar_lea.vmem %s53_s15, 4096  ;;  %p1263_p6 = scmp.lt.s32.totalorder %s53_s15, %s53_s15 }
  0x2b   :  { %p1259_p5 = scmp.ne.s32.totalorder %s53_s15, %s1258_s14  ;;  %p1264_p7 = scmp.lt.s32.totalorder %s1258_s14, %s1258_s14 }
  0x2d   :  { %p1265_p8 = por %p1264_p7, %p1263_p6 }
  0x2f   :  { %p1266_p9 = pnand %p1265_p8, %p1259_p5 }
  0x31   :  { %1269 = shalt.err (!%p1266_p9)
}
  0x32   :  { %s1303_s0 = smov 128   ;;  %s1304_s13 = smov 8  }
  0x33   :  { %58 = dma.hbm_to_vmem [thread:$0]  %s1458_s5, 4096, %s53_s15, [#allocation5], %s1303_s0, %s1303_s0, %s1304_s13  }
  0x34   :  { %s1305_s19 = smov [#allocation7]   ;;  %s1270_s23 = scalar_lea.hbm %s1460_s7, 4096 }
  0x35   :  { %s66_s20 = sshll.u32 %s1305_s19, 4  ;;  %p1271_p10 = scmp.ne.s32.totalorder %s1460_s7, %s1270_s23  ;;  %s67_s20 = int_to_ptr.vmem [resolvable:$true] %s66_s20 }
  0x36   :  { %p1274_p11 = scmp.lt.u32.totalorder %s1270_s23, %s1460_s7 }
  0x38   :  { %p1276_p12 = pnand %p1274_p11, %p1271_p10 }
  0x3a   :  { %1279 = shalt.err (!%p1276_p12)
}
  0x3b   :  { %s1280_s26 = scalar_lea.vmem %s67_s20, 4096  ;;  %p1285_p0 = scmp.lt.s32.totalorder %s67_s20, %s67_s20 }
  0x3c   :  { %p1281_p13 = scmp.ne.s32.totalorder %s67_s20, %s1280_s26  ;;  %p1286_p1 = scmp.lt.s32.totalorder %s1280_s26, %s1280_s26 }
  0x3e   :  { %p1287_p2 = por %p1286_p1, %p1285_p0 }
  0x40   :  { %p1288_p3 = pnand %p1287_p2, %p1281_p13 }
  0x42   :  { %1291 = shalt.err (!%p1288_p3)
}
  0x43   :  { %72 = dma.hbm_to_vmem [thread:$0]  %s1460_s7, 4096, %s67_s20, [#allocation8], %s1303_s0, %s1303_s0, %s1304_s13  }
  0x44   :  { %1292 = dma.done.wait [#allocation3], 128  }
  0x45   :  { %1293 = vsyncadd [#allocation3], 4294967168 }
  0x46   :  { %1294 = dma.done.wait [#allocation5], 5120  }
  0x47   :  { %1295 = vsyncadd [#allocation5], 4294962176 }
  0x48   :  { %1296 = dma.done.wait [#allocation8], 4096  }
  0x49   :  { %1297 = vsyncadd [#allocation8], 4294963200  ;;  %v1306_v0 = vmov 0.0   ;;  %v101_v1 = vld [vmem:[%s1456_s3] sm:$0xff]  ;;  %vm111_vm0 = vcmask 1043456   ;;  %v102_v2 = vld [vmem:[%s1456_s3 + $0x8] sm:$0xff] }
  0x4a   :  { %184 = vmatprep.mubr.f32.mxu0 %v1306_v0  ;;  %255 = vmatprep.mubr.f32.mxu1 %v1306_v0  ;;  %v92_v3 = vld [vmem:[%s1454_s1] sm:$0xff]  ;;  %v105_v4 = vcombine.high %v101_v1, %v101_v1  ;;  %v106_v5 = vcombine.high %v102_v2, %v102_v2  ;;  %v94_v6 = vld [vmem:[#allocation4 + $0x8] sm:$0xff]  ;;  %v93_v8 = vld [vmem:[#allocation4] sm:$0xff]  ;;  %vm107_vm1 = vcmask 31744   ;;  %vm1307_vm2 = vmmov 1  }
  0x4b   :  { %v98_v7 = vld [vmem:[#allocation4 + $0x28] sm:$0xf]  ;;  %v97_v10 = vld [vmem:[#allocation4 + $0x20] sm:$0xf]  ;;  %v96_v11 = vld [vmem:[#allocation4 + $0x18] sm:$0xff]  ;;  %vm262_vm4 = vcmask 97280  }
  0x4c   :  { %v1080_v9 = vpack.c.bf16 %v98_v7, %v94_v6  ;;  %v100_v12 = vld [vmem:[#allocation4 + $0x38] sm:$0xf]  ;;  %1002 = vmatprep.subr.msk.mxu0 %vm111_vm0, %v105_v4  ;;  %1005 = vmatprep.subr.msk.mxu1 %vm111_vm0, %v106_v5  ;;  %vm1081_vm3 = vmpackc.low %vm111_vm0, %vm1307_vm2  ;;  %v1083_v13 = vpack.c.bf16 %v97_v10, %v93_v8  ;;  %v95_v15 = vld [vmem:[#allocation4 + $0x10] sm:$0xff]  ;;  %vm983_vm5 = vcmask 7168   ;;  %vm993_vm6 = vcmask 15360  }
  0x4d   :  { %v1086_v14 = vpack.c.bf16 %v100_v12, %v96_v11  ;;  %v99_v16 = vld [vmem:[#allocation4 + $0x30] sm:$0xf]  ;;  %1003 = vmatpush1.msk.msra.mxu0 %vm111_vm0, %v101_v1  ;;  %1006 = vmatpush1.msk.msra.mxu1 %vm111_vm0, %v102_v2  ;;  %v1110_v18 = vld [vmem:[#allocation6 + $0x4] ss:$8 sps:$4 sm:$0xff]   ;;  %v91_v20 = vld [vmem:[#allocation2] sm:$0xff] }
  0x4e   :  { %v1089_v17 = vpack.c.bf16 %v99_v16, %v95_v15  ;;  %1004 = vmatmul.mubr.msk.f32.vlgmr.msra.gmra.mrb[0].mxu0 %vm107_vm1, %v92_v3  ;;  %1007 = vmatmul.mubr.msk.f32.vlgmr.msra.gmra.mrb[0].mxu1 %vm107_vm1, %v92_v3  ;;  %v1113_v19 = vld [vmem:[#allocation7 + $0x4] ss:$8 sps:$4 sm:$0xff]   ;;  %v1108_v21 = vld [vmem:[#allocation6] ss:$8 sps:$4 sm:$0xff]   ;;  %v1116_v23 = vld [vmem:[#allocation6 + $0x14] ss:$8 sps:$4 sm:$0xff]  }
  0x4f   :  { %1082 = vmatprep.subr.msk.bf16.mxu0 %vm1081_vm3, %v1080_v9  ;;  %1088 = vmatprep.subr.msk.bf16.mxu1 %vm1081_vm3, %v1086_v14  ;;  %v1111_v22 = vld [vmem:[#allocation7] ss:$8 sps:$4 sm:$0xff]   ;;  %v1119_v24 = vld [vmem:[#allocation7 + $0x14] ss:$8 sps:$4 sm:$0xff]   ;;  %v1114_v25 = vld [vmem:[#allocation6 + $0x10] ss:$8 sps:$4 sm:$0xff]  }
  0x50   :  { %1085 = vmatpush1.bf16.msk.msra.mxu0 %vm1081_vm3, %v1083_v13  ;;  %1091 = vmatpush1.bf16.msk.msra.mxu1 %vm1081_vm3, %v1089_v17  ;;  %v1117_v26 = vld [vmem:[#allocation7 + $0x10] ss:$8 sps:$4 sm:$0xff]   ;;  %v1122_v27 = vld [vmem:[#allocation6 + $0x24] ss:$8 sps:$4 sm:$0xff]   ;;  %v1120_v29 = vld [vmem:[#allocation6 + $0x20] ss:$8 sps:$4 sm:$0xff]  }
  0x51   :  { %342 = vmatprep.mubr.f32.mxu0 %v1306_v0  ;;  %413 = vmatprep.mubr.f32.mxu1 %v1306_v0  ;;  %v1125_v28 = vld [vmem:[#allocation7 + $0x24] ss:$8 sps:$4 sm:$0xff]   ;;  %v1123_v30 = vld [vmem:[#allocation7 + $0x20] ss:$8 sps:$4 sm:$0xff]   ;;  %v1128_v31 = vld [vmem:[#allocation6 + $0x34] ss:$8 sps:$4 sm:$0xff]  }
  0x52   :  { %656 = vmatprep.subr.bf16.mxu0 %v1110_v18  ;;  %905 = vmatprep.subr.bf16.mxu1 %v1113_v19  ;;  %v1131_v32 = vld [vmem:[#allocation7 + $0x34] ss:$8 sps:$4 sm:$0xff]   ;;  %v1126_v33 = vld [vmem:[#allocation6 + $0x30] ss:$8 sps:$4 sm:$0xff]   ;;  %v1134_v35 = vld [vmem:[#allocation6 + $0x44] ss:$8 sps:$4 sm:$0xff]   ;;  %v422_v19 = vlaneseq }
  0x53   :  { %v1129_v34 = vld [vmem:[#allocation7 + $0x30] ss:$8 sps:$4 sm:$0xff]   ;;  %v1137_v36 = vld [vmem:[#allocation7 + $0x44] ss:$8 sps:$4 sm:$0xff]   ;;  %v1132_v37 = vld [vmem:[#allocation6 + $0x40] ss:$8 sps:$4 sm:$0xff]  }
  0x54   :  { %v1135_v38 = vld [vmem:[#allocation7 + $0x40] ss:$8 sps:$4 sm:$0xff]   ;;  %v1140_v39 = vld [vmem:[#allocation6 + $0x54] ss:$8 sps:$4 sm:$0xff]   ;;  %v1138_v41 = vld [vmem:[#allocation6 + $0x50] ss:$8 sps:$4 sm:$0xff]  }
  0x55   :  { %v1143_v40 = vld [vmem:[#allocation7 + $0x54] ss:$8 sps:$4 sm:$0xff]   ;;  %v1141_v42 = vld [vmem:[#allocation7 + $0x50] ss:$8 sps:$4 sm:$0xff]   ;;  %v1146_v43 = vld [vmem:[#allocation6 + $0x64] ss:$8 sps:$4 sm:$0xff]  }
  0x56   :  { %1010 = vmatmul.mubr.msk.f32.vlgmr.msra.gmra.mrb[0].mxu0 %vm262_vm4, %v91_v20  ;;  %1013 = vmatmul.mubr.msk.f32.vlgmr.msra.gmra.mrb[0].mxu1 %vm262_vm4, %v91_v20  ;;  %v1149_v44 = vld [vmem:[#allocation7 + $0x64] ss:$8 sps:$4 sm:$0xff]   ;;  %v1144_v45 = vld [vmem:[#allocation6 + $0x60] ss:$8 sps:$4 sm:$0xff]   ;;  %v1152_v47 = vld [vmem:[#allocation6 + $0x74] ss:$8 sps:$4 sm:$0xff]  }
  0x57   :  { %657 = vmatpush1.bf16.msra.mxu0 %v1108_v21  ;;  %906 = vmatpush1.bf16.msra.mxu1 %v1111_v22  ;;  %v1147_v46 = vld [vmem:[#allocation7 + $0x60] ss:$8 sps:$4 sm:$0xff]   ;;  %v1155_v48 = vld [vmem:[#allocation7 + $0x74] ss:$8 sps:$4 sm:$0xff]   ;;  %v1150_v49 = vld [vmem:[#allocation6 + $0x70] ss:$8 sps:$4 sm:$0xff]  }
  0x58   :  { %658 = vmatprep.subr.bf16.mxu0 %v1116_v23  ;;  %907 = vmatprep.subr.bf16.mxu1 %v1119_v24  ;;  %v1153_v50 = vld [vmem:[#allocation7 + $0x70] ss:$8 sps:$4 sm:$0xff]   ;;  %v1158_v51 = vld [vmem:[#allocation6 + $0x84] ss:$8 sps:$4 sm:$0xff]   ;;  %v1156_v53 = vld [vmem:[#allocation6 + $0x80] ss:$8 sps:$4 sm:$0xff]  }
  0x59   :  { %v1161_v52 = vld [vmem:[#allocation7 + $0x84] ss:$8 sps:$4 sm:$0xff]   ;;  %v1159_v54 = vld [vmem:[#allocation7 + $0x80] ss:$8 sps:$4 sm:$0xff]   ;;  %v1164_v55 = vld [vmem:[#allocation6 + $0x94] ss:$8 sps:$4 sm:$0xff]  }
  0x5a   :  { %v1167_v56 = vld [vmem:[#allocation7 + $0x94] ss:$8 sps:$4 sm:$0xff]   ;;  %v1162_v57 = vld [vmem:[#allocation6 + $0x90] ss:$8 sps:$4 sm:$0xff]   ;;  %v1170_v59 = vld [vmem:[#allocation6 + $0xa4] ss:$8 sps:$4 sm:$0xff]  }
  0x5b   :  { %659 = vmatpush1.bf16.msra.mxu0 %v1114_v25  ;;  %908 = vmatpush1.bf16.msra.mxu1 %v1117_v26  ;;  %v1165_v58 = vld [vmem:[#allocation7 + $0x90] ss:$8 sps:$4 sm:$0xff]   ;;  %v1173_v60 = vld [vmem:[#allocation7 + $0xa4] ss:$8 sps:$4 sm:$0xff]   ;;  %v1168_v61 = vld [vmem:[#allocation6 + $0xa0] ss:$8 sps:$4 sm:$0xff]  }
  0x5c   :  { %660 = vmatprep.subr.bf16.mxu0 %v1122_v27  ;;  %909 = vmatprep.subr.bf16.mxu1 %v1125_v28  ;;  %v1171_v62 = vld [vmem:[#allocation7 + $0xa0] ss:$8 sps:$4 sm:$0xff]   ;;  %v1176_v63 = vld [vmem:[#allocation6 + $0xb4] ss:$8 sps:$4 sm:$0xff]   ;;  %v1174_v1 = vld [vmem:[#allocation6 + $0xb0] ss:$8 sps:$4 sm:$0xff]  }
  0x5d   :  { %v1179_v0 = vld [vmem:[#allocation7 + $0xb4] ss:$8 sps:$4 sm:$0xff]   ;;  %v1177_v2 = vld [vmem:[#allocation7 + $0xb0] ss:$8 sps:$4 sm:$0xff]   ;;  %v1182_v3 = vld [vmem:[#allocation6 + $0xc4] ss:$8 sps:$4 sm:$0xff]  }
  0x5e   :  { %v1185_v4 = vld [vmem:[#allocation7 + $0xc4] ss:$8 sps:$4 sm:$0xff]   ;;  %v1180_v5 = vld [vmem:[#allocation6 + $0xc0] ss:$8 sps:$4 sm:$0xff]   ;;  %v1188_v7 = vld [vmem:[#allocation6 + $0xd4] ss:$8 sps:$4 sm:$0xff]  }
  0x5f   :  { %661 = vmatpush1.bf16.msra.mxu0 %v1120_v29  ;;  %910 = vmatpush1.bf16.msra.mxu1 %v1123_v30  ;;  %v1183_v6 = vld [vmem:[#allocation7 + $0xc0] ss:$8 sps:$4 sm:$0xff]   ;;  %v1191_v8 = vld [vmem:[#allocation7 + $0xd4] ss:$8 sps:$4 sm:$0xff]   ;;  %v1186_v9 = vld [vmem:[#allocation6 + $0xd0] ss:$8 sps:$4 sm:$0xff]  }
  0x60   :  { %662 = vmatprep.subr.bf16.mxu0 %v1128_v31  ;;  %911 = vmatprep.subr.bf16.mxu1 %v1131_v32  ;;  %v1189_v10 = vld [vmem:[#allocation7 + $0xd0] ss:$8 sps:$4 sm:$0xff]   ;;  %v1194_v11 = vld [vmem:[#allocation6 + $0xe4] ss:$8 sps:$4 sm:$0xff]   ;;  %v1192_v13 = vld [vmem:[#allocation6 + $0xe0] ss:$8 sps:$4 sm:$0xff]  }
  0x61   :  { %v1197_v12 = vld [vmem:[#allocation7 + $0xe4] ss:$8 sps:$4 sm:$0xff]   ;;  %v1195_v14 = vld [vmem:[#allocation7 + $0xe0] ss:$8 sps:$4 sm:$0xff]   ;;  %v1200_v15 = vld [vmem:[#allocation6 + $0xf4] ss:$8 sps:$4 sm:$0xff]  }
  0x62   :  { %v1203_v16 = vld [vmem:[#allocation7 + $0xf4] ss:$8 sps:$4 sm:$0xff]   ;;  %v1198_v17 = vld [vmem:[#allocation6 + $0xf0] ss:$8 sps:$4 sm:$0xff]   ;;  %v423_v20 = vshrl.u32 %v422_v19, 7 }
  0x63   :  { %663 = vmatpush1.bf16.msra.mxu0 %v1126_v33  ;;  %912 = vmatpush1.bf16.msra.mxu1 %v1129_v34  ;;  %v1201_v18 = vld [vmem:[#allocation7 + $0xf0] ss:$8 sps:$4 sm:$0xff]  }
  0x64   :  { %664 = vmatprep.subr.bf16.mxu0 %v1134_v35  ;;  %913 = vmatprep.subr.bf16.mxu1 %v1137_v36  ;;  %v424_v21 = vsub.s32 0, %v423_v20  ;;  %v432_v22 = vsub.s32 2, %v423_v20  ;;  %v420_v23 = vld [vmem:[%s1457_s4] sm:$0xf]  ;;  %v428_v24 = vsub.s32 1, %v423_v20  ;;  %v436_v25 = vsub.s32 3, %v423_v20 }
  0x66   :  { %v425_v26 = vrot.slane %v420_v23, %v424_v21  ;;  %v433_v27 = vrot.slane %v420_v23, %v432_v22  ;;  %v429_v28 = vrot.slane %v420_v23, %v428_v24  ;;  %v437_v29 = vrot.slane %v420_v23, %v436_v25 }
  0x67   :  { %665 = vmatpush1.bf16.msra.mxu0 %v1132_v37  ;;  %914 = vmatpush1.bf16.msra.mxu1 %v1135_v38 }
  0x68   :  { %666 = vmatprep.subr.bf16.mxu0 %v1140_v39  ;;  %915 = vmatprep.subr.bf16.mxu1 %v1143_v40 }
  0x6b   :  { %667 = vmatpush1.bf16.msra.mxu0 %v1138_v41  ;;  %916 = vmatpush1.bf16.msra.mxu1 %v1141_v42 }
  0x6c   :  { %668 = vmatprep.subr.bf16.mxu0 %v1146_v43  ;;  %917 = vmatprep.subr.bf16.mxu1 %v1149_v44 }
  0x6f   :  { %669 = vmatpush1.bf16.msra.mxu0 %v1144_v45  ;;  %918 = vmatpush1.bf16.msra.mxu1 %v1147_v46  ;;  %v484_v46 = vld [vmem:[%s1459_s6] sm:$0x3] }
  0x70   :  { %670 = vmatprep.subr.bf16.mxu0 %v1152_v47  ;;  %919 = vmatprep.subr.bf16.mxu1 %v1155_v48  ;;  %v733_v47 = vld [vmem:[%s1461_s8] sm:$0x3]  ;;  %v489_v48 = vrot.slane %v484_v46, %v424_v21 }
  0x73   :  { %671 = vmatpush1.bf16.msra.mxu0 %v1150_v49  ;;  %920 = vmatpush1.bf16.msra.mxu1 %v1153_v50  ;;  %v738_v49 = vrot.slane %v733_v47, %v424_v21  ;;  %v1078_v50 = vld [vmem:[%s1462_s9 + $0x1] ss:$2 sm:$0x3] }
  0x74   :  { %672 = vmatprep.subr.bf16.mxu0 %v1158_v51  ;;  %921 = vmatprep.subr.bf16.mxu1 %v1161_v52  ;;  %v493_v51 = vrot.slane %v484_v46, %v428_v24  ;;  %v742_v52 = vrot.slane %v733_v47, %v428_v24 }
  0x77   :  { %673 = vmatpush1.bf16.msra.mxu0 %v1156_v53  ;;  %922 = vmatpush1.bf16.msra.mxu1 %v1159_v54  ;;  %v948_v53 = vld [vmem:[%s1462_s9] ss:$2 sm:$0x3] }
  0x78   :  { %674 = vmatprep.subr.bf16.mxu0 %v1164_v55  ;;  %923 = vmatprep.subr.bf16.mxu1 %v1167_v56 }
  0x7b   :  { %675 = vmatpush1.bf16.msra.mxu0 %v1162_v57  ;;  %924 = vmatpush1.bf16.msra.mxu1 %v1165_v58  ;;  %v971_v58 = vrot.slane %v1078_v50, %v424_v21 }
  0x7c   :  { %676 = vmatprep.subr.bf16.mxu0 %v1170_v59  ;;  %925 = vmatprep.subr.bf16.mxu1 %v1173_v60 }
  0x7f   :  { %677 = vmatpush1.bf16.msra.mxu0 %v1168_v61  ;;  %926 = vmatpush1.bf16.msra.mxu1 %v1171_v62  ;;  %v955_v61 = vrot.slane %v948_v53, %v424_v21 }
  0x80   :  { %678 = vmatprep.subr.bf16.mxu0 %v1176_v63  ;;  %927 = vmatprep.subr.bf16.mxu1 %v1179_v0  ;;  %v975_v0 = vrot.slane %v1078_v50, %v428_v24 }
  0x83   :  { %679 = vmatpush1.bf16.msra.mxu0 %v1174_v1  ;;  %928 = vmatpush1.bf16.msra.mxu1 %v1177_v2 }
  0x84   :  { %680 = vmatprep.subr.bf16.mxu0 %v1182_v3  ;;  %929 = vmatprep.subr.bf16.mxu1 %v1185_v4  ;;  %v959_v3 = vrot.slane %v948_v53, %v428_v24 }
  0x87   :  { %681 = vmatpush1.bf16.msra.mxu0 %v1180_v5  ;;  %930 = vmatpush1.bf16.msra.mxu1 %v1183_v6 }
  0x88   :  { %682 = vmatprep.subr.bf16.mxu0 %v1188_v7  ;;  %931 = vmatprep.subr.bf16.mxu1 %v1191_v8 }
  0x8b   :  { %683 = vmatpush1.bf16.msra.mxu0 %v1186_v9  ;;  %932 = vmatpush1.bf16.msra.mxu1 %v1189_v10 }
  0x8c   :  { %684 = vmatprep.subr.bf16.mxu0 %v1194_v11  ;;  %933 = vmatprep.subr.bf16.mxu1 %v1197_v12 }
  0x8f   :  { %685 = vmatpush1.bf16.msra.mxu0 %v1192_v13  ;;  %934 = vmatpush1.bf16.msra.mxu1 %v1195_v14 }
  0x90   :  { %686 = vmatprep.subr.bf16.mxu0 %v1200_v15  ;;  %935 = vmatprep.subr.bf16.mxu1 %v1203_v16 }
  0x93   :  { %687 = vmatpush1.bf16.msra.mxu0 %v1198_v17  ;;  %936 = vmatpush1.bf16.msra.mxu1 %v1201_v18  ;;  %v1079_v17 = vld [vmem:[%s1463_s10] ss:$0 sm:$0xff] }
 0x129   :  { %v344_v30 = vpop.f32.mrb[0].mxu0  ;;  %v415_v31 = vpop.f32.mrb[0].mxu1 }
 0x12a   :  { %v442_v32 = vadd.f32 %v425_v26, %v344_v30  ;;  %v444_v33 = vadd.f32 %v433_v27, %v415_v31  ;;  %v346_v34 = vpop.f32.mrb[1].mxu0  ;;  %v417_v35 = vpop.f32.mrb[1].mxu1 }
 0x12b   :  { %v443_v36 = vadd.f32 %v429_v28, %v346_v34  ;;  %v445_v37 = vadd.f32 %v437_v29, %v417_v35 }
 0x12c   :  { %v446_v38 = vmax.f32 %v442_v32, 0.0  ;;  %v448_v39 = vmax.f32 %v444_v33, 0.0 }
 0x12d   :  { %v447_v40 = vmax.f32 %v443_v36, 0.0  ;;  %v449_v41 = vmax.f32 %v445_v37, 0.0 }
 0x12e   :  { %v450_v44 = vpack.c.bf16 %v446_v38, %v446_v38  ;;  %v699_v45 = vpack.c.bf16 %v448_v39, %v448_v39 }
 0x12f   :  { %v451_v42 = vpack.c.bf16 %v447_v40, %v447_v40  ;;  %v700_v43 = vpack.c.bf16 %v449_v41, %v449_v41 }
 0x131   :  { %688 = vmatprep.mubr.bf16.mxu0 %v451_v42  ;;  %937 = vmatprep.mubr.bf16.mxu1 %v700_v43 }
 0x132   :  { %689 = vmatmul.mubr.bf16.vlgmr.msra.gmra.mrb[4].mxu0 %v450_v44  ;;  %938 = vmatmul.mubr.bf16.vlgmr.msra.gmra.mrb[4].mxu1 %v699_v45 }
 0x205   :  { %v690_v54 = vpop.f32.mrb[4].mxu0  ;;  %v939_v55 = vpop.f32.mrb[4].mxu1 }
 0x206   :  { %v691_v56 = vadd.f32 %v690_v54, %v489_v48  ;;  %v940_v57 = vadd.f32 %v939_v55, %v738_v49  ;;  %v692_v59 = vpop.f32.mrb[5].mxu0  ;;  %v941_v60 = vpop.f32.mrb[5].mxu1 }
 0x207   :  { %v693_v62 = vadd.f32 %v692_v59, %v493_v51  ;;  %v942_v63 = vadd.f32 %v941_v60, %v742_v52  ;;  %v694_v1 = vpop.f32.mrb[6].mxu0  ;;  %v943_v2 = vpop.f32.mrb[6].mxu1 }
 0x208   :  { %v697_v4 = vmax.f32 %v691_v56, 0.0  ;;  %v946_v5 = vmax.f32 %v940_v57, 0.0  ;;  %v695_v6 = vpop.f32.mrb[7].mxu0  ;;  %v944_v7 = vpop.f32.mrb[7].mxu1 }
 0x209   :  { %v698_v8 = vmax.f32 %v693_v62, 0.0  ;;  %v947_v9 = vmax.f32 %v942_v63, 0.0 }
 0x20a   :  { %v978_v10 = vmul.f32 %v971_v58, %v946_v5  ;;  %v962_v11 = vmul.f32 %v955_v61, %v697_v4 }
 0x20b   :  { %v979_v12 = vmul.f32 %v975_v0, %v947_v9  ;;  %v963_v13 = vmul.f32 %v959_v3, %v698_v8 }
 0x20d   :  { %v964_v14 = vadd.f32 %v963_v13, %v962_v11  ;;  %v980_v15 = vadd.f32 %v979_v12, %v978_v10 }
 0x20f   :  { %965 = vadd.xlane.f32.xlu0 %v964_v14 }
 0x213   :  { %981 = vadd.xlane.f32.xlu0 %v980_v15 }
 0x29c   :  { %v966_v16 = vpop.xlane.xlu0 %965 }
 0x2a0   :  { %v982_v18 = vpop.xlane.xlu0 %981 }
 0x2a1   :  { %v984_v19 = vsel %vm983_vm5, %v966_v16, %v982_v18 }
 0x2a2   :  { %v992_v20 = vadd.f32 %v1079_v17, %v984_v19 }
 0x2a4   :  { %994 = vst.msk [vmem:[%s1464_s11] sm:$0xff] %vm993_vm6, %v992_v20 }
 0x2a5   :  { %999 = vsyncpa [#allocation3], 1 }
 0x2a6   :  { %1000 = vsyncpa [#allocation5], 1 }
 0x2a7   :  { %1001 = vsyncpa [#allocation8], 1 }

</bundles_post_ra>
